<compile_context>
chip_gen: v7x
topology: tpu7x:2x2x1
jax: 0.10.0
libtpu: 0.0.40
codegen_flags: <defaults>
</compile_context>

<pallas_src>
import functools

import jax
import jax.numpy as jnp
from jax.experimental import pallas as pl
from jax.experimental.pallas import tpu as pltpu


def _round_up(x, m):
    return (x + m - 1) // m * m


def spec_embedding_kernel(spec_ref, w_sel_ref, b_ref, out_ref):
    # spec_ref:  (TB, N)        batch tile of control features
    # w_sel_ref: (N, N*D)       block-diagonal expanded weight (grid-invariant)
    # b_ref:     (1, N*D)       flattened bias                (grid-invariant)
    # out_ref:   (TB, N*D)      lane-dense output tile
    acc = jnp.dot(
        spec_ref[...],
        w_sel_ref[...],
        preferred_element_type=jnp.float32,
        precision=jax.lax.Precision.HIGHEST,   # full-f32 MXU path
    )
    out_ref[...] = (acc + b_ref[...]).astype(out_ref.dtype)


@functools.partial(jax.jit, static_argnames=("block_b", "force_pallas"))
def spec_embedding(spec, w, b, *, block_b=8192, force_pallas=False):
    """spec: (B, N), w: (N, D), b: (N, D) -> (B, N, D).

    out[b, i, d] = spec[b, i] * w[i, d] + b[i, d]
    """
    B, N = spec.shape
    N2, D = w.shape
    assert N == N2 and b.shape == (N, D)
    ND = N * D
    out_dtype = jnp.result_type(spec.dtype, w.dtype, b.dtype)
    isz = jnp.dtype(out_dtype).itemsize

    # Small-problem fallback: launch overhead dwarfs ~KiB of traffic.
    if not force_pallas and B * ND * isz < (1 << 20):
        return (spec[:, :, None] * w[None, :, :] + b[None, :, :]).astype(out_dtype)

    # Block-diagonal expanded weight: w_sel[i, j*D + k] = w[i, k] if i == j else 0.
    w_sel = (jnp.eye(N, dtype=out_dtype)[:, :, None]
             * w[None, :, :].astype(out_dtype)).reshape(N, ND)
    b_flat = b.reshape(1, ND).astype(out_dtype)

    # Batch-tile sizing: budget ~28 MiB for the double-buffered (spec + out)
    # tiles, counting spec's lane padding (minor dim padded to 128 in VMEM).
    bytes_per_row = (_round_up(N, 128) + _round_up(ND, 128)) * isz
    tb_cap = max(8, (28 << 20) // (2 * bytes_per_row))
    tb = min(block_b, tb_cap, _round_up(pl.cdiv(B, 2), 8))  # >=2 grid steps (v7x 2 TCs)
    if tb >= B:
        tb = B                                  # single block == full (tiny) batch
    else:
        tb = _round_up(tb, 8)                   # satisfy the (8, 128) tiling rule
    grid = (pl.cdiv(B, tb),)

    cost = pl.CostEstimate(
        flops=2 * B * N * D,
        transcendentals=0,
        bytes_accessed=(B * N + N * ND + ND + B * ND) * isz,
    )

    out_flat = pl.pallas_call(
        spec_embedding_kernel,
        out_shape=jax.ShapeDtypeStruct((B, ND), out_dtype),
        grid=grid,
        in_specs=[
            pl.BlockSpec((tb, N), lambda i: (i, 0)),    # spec batch tile
            pl.BlockSpec((N, ND), lambda i: (0, 0)),    # w_sel, grid-invariant
            pl.BlockSpec((1, ND), lambda i: (0, 0)),    # bias,  grid-invariant
        ],
        out_specs=pl.BlockSpec((tb, ND), lambda i: (i, 0)),
        compiler_params=pltpu.CompilerParams(
            dimension_semantics=("parallel",),          # megacore / 2-TC sharding
            vmem_limit_bytes=48 << 20,
        ),
        cost_estimate=cost,
    )(spec.astype(out_dtype), w_sel, b_flat)

    return out_flat.reshape(B, N, D)


def spec_embedding_ref(spec, w, b):
    # Pure-JAX reference with identical semantics to the PyTorch module.
    return spec[:, :, None] * w[None, :, :] + b[None, :, :]


if __name__ == "__main__":
    # Module-consistent small shapes: batch=2, num_control_features=4, dim=32.
    B, N, D = 2, 4, 32
    key = jax.random.PRNGKey(0)
    k_spec, k_w, k_b, k_big = jax.random.split(key, 4)

    spec = jax.random.normal(k_spec, (B, N), dtype=jnp.float32)
    # Deterministic init of the N Linear(1, dim) layers (U(-1,1), bound=1/sqrt(1)).
    w = jax.random.uniform(k_w, (N, D), dtype=jnp.float32, minval=-1.0, maxval=1.0)
    b = jax.random.uniform(k_b, (N, D), dtype=jnp.float32, minval=-1.0, maxval=1.0)

    # 1) Module-default shapes through the Pallas kernel itself.
    out = jax.block_until_ready(spec_embedding(spec, w, b, force_pallas=True))
    ref = spec_embedding_ref(spec, w, b)
    assert out.shape == (B, N, D)
    assert jnp.allclose(out, ref, atol=1e-5, rtol=1e-5), "mismatch vs reference (small)"

    # 2) Same shapes through the small-problem XLA fallback.
    out_fb = jax.block_until_ready(spec_embedding(spec, w, b))
    assert jnp.allclose(out_fb, ref, atol=1e-5, rtol=1e-5), "mismatch vs reference (fallback)"

    # 3) Larger batch: multi-step grid with a ragged tail block.
    B_big = 5000
    spec_big = jax.random.normal(k_big, (B_big, N), dtype=jnp.float32)
    out_big = jax.block_until_ready(spec_embedding(spec_big, w, b))
    ref_big = spec_embedding_ref(spec_big, w, b)
    assert out_big.shape == (B_big, N, D)
    assert jnp.allclose(out_big, ref_big, atol=1e-5, rtol=1e-5), "mismatch vs reference (tiled)"

    print("KERNEL_OK")
</pallas_src>

<mosaic_0001>
module attributes {stable_mosaic.version = 11 : i64} {
  func.func @spec_embedding_kernel(%arg0: i32, %arg1: memref<2x4xf32, #tpu.memory_space<vmem>>, %arg2: memref<4x128xf32, #tpu.memory_space<vmem>>, %arg3: memref<1x128xf32, #tpu.memory_space<vmem>>, %arg4: memref<2x128xf32, #tpu.memory_space<vmem>>) attributes {dimension_semantics = [#tpu.dimension_semantics<parallel>], iteration_bounds = array<i64: 1>, scalar_prefetch = 0 : i64, scratch_operands = 0 : i64, tpu.core_type = #tpu.core_type<tc>, window_params = [{transform_indices = @transform_0, window_bounds = array<i64: 2, 4>}, {pipeline_mode = #tpu.pipeline_mode<synchronous>, transform_indices = @transform_1, window_bounds = array<i64: 4, 128>}, {pipeline_mode = #tpu.pipeline_mode<synchronous>, transform_indices = @transform_2, window_bounds = array<i64: 1, 128>}, {transform_indices = @transform_3, window_bounds = array<i64: 2, 128>}]} {
    %c0 = arith.constant 0 : index
    %c0_0 = arith.constant 0 : index
    %0 = vector.load %arg1[%c0, %c0_0] : memref<2x4xf32, #tpu.memory_space<vmem>>, vector<2x4xf32>
    %c0_1 = arith.constant 0 : index
    %c0_2 = arith.constant 0 : index
    %1 = vector.load %arg2[%c0_1, %c0_2] : memref<4x128xf32, #tpu.memory_space<vmem>>, vector<4x128xf32>
    %cst = arith.constant dense<0.000000e+00> : vector<2x128xf32>
    %2 = tpu.matmul %0, %1, %cst {dimension_numbers = #tpu.dot_dimension_numbers<[1], [0], [0], [1], [0, 0, 1, 1], [], []>, precision = #tpu.contract_precision<fp32>} : vector<2x4xf32>, vector<4x128xf32>, vector<2x128xf32> -> vector<2x128xf32>
    %c0_3 = arith.constant 0 : index
    %c0_4 = arith.constant 0 : index
    %3 = vector.load %arg3[%c0_3, %c0_4] : memref<1x128xf32, #tpu.memory_space<vmem>>, vector<1x128xf32>
    %4 = vector.broadcast %3 : vector<1x128xf32> to vector<2x128xf32>
    %5 = arith.addf %2, %4 : vector<2x128xf32>
    %c0_5 = arith.constant 0 : index
    %c0_6 = arith.constant 0 : index
    %6 = vector.load %arg4[%c0_5, %c0_6] : memref<2x128xf32, #tpu.memory_space<vmem>>, vector<2x128xf32>
    tpu.vector_store %arg4[%c0_5, %c0_6], %5 {strides = array<i32>} : memref<2x128xf32, #tpu.memory_space<vmem>>, vector<2x128xf32>,
    return
  }
  func.func @transform_0(%arg0: i32) -> (i32, i32) {
    %c0_i32 = arith.constant 0 : i32
    %c0_i32_0 = arith.constant 0 : i32
    return %arg0, %c0_i32 : i32, i32
  }
  func.func @transform_1(%arg0: i32) -> (i32, i32) {
    %c0_i32 = arith.constant 0 : i32
    %c0_i32_0 = arith.constant 0 : i32
    %c0_i32_1 = arith.constant 0 : i32
    return %c0_i32, %c0_i32_0 : i32, i32
  }
  func.func @transform_2(%arg0: i32) -> (i32, i32) {
    %c0_i32 = arith.constant 0 : i32
    %c0_i32_0 = arith.constant 0 : i32
    %c0_i32_1 = arith.constant 0 : i32
    return %c0_i32, %c0_i32_0 : i32, i32
  }
  func.func @transform_3(%arg0: i32) -> (i32, i32) {
    %c0_i32 = arith.constant 0 : i32
    %c0_i32_0 = arith.constant 0 : i32
    return %arg0, %c0_i32 : i32, i32
  }
}

</mosaic_0001>

<bundles_post_ra>
// kernel: spec_embedding.1
= control target key start
LH: loop header
LB: loop body
LE: loop exit
PB: predicated region body
PF: predicated region fallthrough
CT: control target
= control target key end

     0   :  { %vm27_vm0 = vcmask 1043456   ;;  %vm23_vm1 = vcmask 31744   ;;  %v537_v0 = vmov 0.0   ;;  %vm538_vm2 = vmmov 0   ;;  %s577_s1 = inlined_call_operand.vmem [shape: f32[4,128], index: 1, kind: input, shape index: {}]   ;;  %s578_s0 = inlined_call_operand.vmem [shape: f32[2,4], index: 0, kind: input, shape index: {}]   ;;  %s579_s2 = inlined_call_operand.vmem [shape: f32[1,128], index: 2, kind: input, shape index: {}]   ;;  %s580_s3 = inlined_call_operand.vmem [shape: f32[2,128], index: 3, kind: output, shape index: {}]  }
   0x1   :  { %510 = vmatprep.subr.mxu0 %v537_v0  ;;  %v15_v1 = vld [vmem:[%s577_s1] sm:$0xf]  ;;  %512 = vmatprep.mubr.msk.f32.mxu0 %vm538_vm2, %v537_v0 }
   0x2   :  { %v14_v2 = vld [vmem:[%s578_s0] sm:$0x3]  ;;  %v29_v3 = vsel %vm27_vm0, %v15_v1, 0  ;;  %495 = vmatprep.subr.mxu1 %v537_v0  ;;  %497 = vmatprep.mubr.msk.f32.mxu1 %vm538_vm2, %v537_v0 }
   0x3   :  { %v25_v4 = vsel %vm23_vm1, %v14_v2, 0  ;;  %v32_v5 = vand.u32 4294901760, %v29_v3  ;;  %v482_v17 = vld [vmem:[%s579_s2] ss:$0 sm:$0xff] }
   0x4   :  { %v97_v6 = vand.u32 4294901760, %v25_v4 }
   0x5   :  { %v109_v7 = vsub.f32 %v29_v3, %v32_v5  ;;  %511 = vmatpush3.msra.mxu0 %v32_v5  ;;  %496 = vmatpush3.msra.mxu1 %v32_v5 }
   0x6   :  { %v98_v8 = vsub.f32 %v25_v4, %v97_v6  ;;  %500 = vmatprep.subr.mxu1 %v537_v0  ;;  %515 = vmatprep.subr.mxu0 %v537_v0 }
   0x7   :  { %v110_v10 = vand.u32 4294901760, %v109_v7 }
   0x8   :  { %v99_v9 = vand.u32 4294901760, %v98_v8 }
   0x9   :  { %v111_v12 = vsub.f32 %v109_v7, %v110_v10 }
   0xa   :  { %513 = vmatmul.mubr.f32.vlgmr.msra.gmra.mrb[0].mxu0 %v99_v9  ;;  %v100_v11 = vsub.f32 %v98_v8, %v99_v9 }
   0xb   :  { %516 = vmatpush3.msra.mxu0 %v110_v10  ;;  %517 = vmatprep.mubr.msk.f32.mxu0 %vm538_vm2, %v537_v0  ;;  %v112_v14 = vand.u32 4294901760, %v111_v12 }
   0xc   :  { %v101_v13 = vand.u32 4294901760, %v100_v11  ;;  %520 = vmatprep.subr.mxu0 %v537_v0 }
   0xe   :  { %498 = vmatmul.mubr.f32.vlgmr.msra.gmra.mrb[0].mxu1 %v101_v13 }
   0xf   :  { %501 = vmatpush3.msra.mxu1 %v112_v14  ;;  %502 = vmatprep.mubr.msk.f32.mxu1 %vm538_vm2, %v537_v0 }
  0x10   :  { %505 = vmatprep.subr.mxu1 %v537_v0 }
  0x12   :  { %518 = vmatmul.mubr.f32.vlgmr.msra.gmra.mrb[0].mxu0 %v97_v6 }
  0x13   :  { %521 = vmatpush3.msra.mxu0 %v32_v5  ;;  %522 = vmatprep.mubr.msk.f32.mxu0 %vm538_vm2, %v537_v0 }
  0x16   :  { %503 = vmatmul.mubr.f32.vlgmr.msra.gmra.mrb[0].mxu1 %v97_v6 }
  0x17   :  { %506 = vmatpush3.msra.mxu1 %v109_v7  ;;  %507 = vmatprep.mubr.msk.f32.mxu1 %vm538_vm2, %v537_v0 }
  0x1a   :  { %523 = vmatmul.mubr.f32.vlgmr.msra.gmra.mrb[0].mxu0 %v97_v6 }
  0x1e   :  { %508 = vmatmul.mubr.f32.vlgmr.msra.gmra.mrb[0].mxu1 %v98_v8 }
  0xed   :  { %v473_v15 = vpop.f32.mrb[0].mxu0 }
  0xee   :  { %v524_v16 = vpop.f32.mrb[1].mxu0 }
  0xf1   :  { %v253_v18 = vpop.f32.mrb[0].mxu1 }
  0xf2   :  { %v525_v19 = vadd.f32 %v482_v17, %v253_v18  ;;  %v509_v20 = vpop.f32.mrb[1].mxu1 }
  0xf4   :  { %v526_v21 = vadd.f32 %v525_v19, %v473_v15 }
  0xf6   :  { %477 = vst [vmem:[%s580_s3] sm:$0x3] %v526_v21 }

</bundles_post_ra>
